<compile_context>
chip_gen: v6e
topology: v6e:2x2x1
jax: 0.10.0
libtpu: 0.0.40
codegen_flags: <defaults>
</compile_context>

<pallas_src>
import functools

import jax
import jax.numpy as jnp
import numpy as np
from jax.experimental import pallas as pl
from jax.experimental.pallas import tpu as pltpu


def _estimator_kernel(img_ref, w1_ref, b1_ref, wd_ref, bd_ref, w2_ref, b2_ref,
                      fea_ref, map_ref, *, H, W, K):
    HW = H * W
    C_mid = w1_ref.shape[0]
    P = K // 2

    img = img_ref[0].astype(jnp.float32)                        # (Cimg, HW)

    # conv1 (1x1) with the channel mean folded into the weight.
    x1 = (jnp.dot(w1_ref[...], img, preferred_element_type=jnp.float32)
          + b1_ref[...])                                        # (Cmid, HW)

    # ---- grouped 5x5 conv (padding=2) as a single fused-K matmul ----------
    x1b = x1.astype(jnp.bfloat16)                               # (Cmid, HW)

    # pixel-column index of every lane (for horizontal-tap validity masking)
    col = jax.lax.broadcasted_iota(jnp.int32, (1, HW), 1) % W   # (1, HW)

    def lane_shift(v, s):
        # out[:, l] = v[:, l + s], zero-filled outside [0, HW).
        if s == 0:
            return v
        z = jnp.zeros((v.shape[0], abs(s)), v.dtype)
        if s > 0:
            return jnp.concatenate([v[:, s:], z], axis=1)
        return jnp.concatenate([z, v[:, :HW + s]], axis=1)

    # Horizontal taps first: 5 shifted + column-masked slabs (masks hoisted
    # out of the ky loop), then 25 pure vertical shifts (zero fill handles
    # the vertical padding; masked columns shift along with their rows).
    xh = {}
    for dx in range(-P, P + 1):
        t = lane_shift(x1b, dx)
        if dx != 0:
            valid = jnp.logical_and(col + dx >= 0, col + dx < W)
            t = jnp.where(valid, t, jnp.zeros_like(t))
        xh[dx] = t

    taps = []
    for ky in range(K):
        dy = ky - P
        for kx in range(K):
            dx = kx - P
            taps.append(lane_shift(xh[dx], dy * W))             # (Cmid, HW)

    # sublane-aligned concat (each piece is Cmid = 16 rows) -> (25*Cmid, HW)
    im2col = jnp.concatenate(taps, axis=0)

    fea = (jnp.dot(wd_ref[...], im2col, preferred_element_type=jnp.float32)
           + bd_ref[...])                                       # (Cmid, HW) f32

    # conv2 (1x1)
    out = (jnp.dot(w2_ref[...], fea, preferred_element_type=jnp.float32)
           + b2_ref[...])                                       # (Cout, HW)

    # lane-dense stores (last dim = H*W)
    fea_ref[0] = fea.astype(fea_ref.dtype)
    map_ref[0] = out.astype(map_ref.dtype)


def illumination_estimator(img_nchw, params):
    """img_nchw: (B, 3, H, W) float32.  Returns (illu_fea, illu_map), NCHW."""
    w1, b1, wd, bd, w2, b2 = (params[k] for k in ("w1", "b1", "wd", "bd",
                                                  "w2", "b2"))
    B, C_img, H, W = img_nchw.shape
    HW = H * W
    C_mid = w1.shape[0]
    C_out = w2.shape[0]
    gs_in = wd.shape[1]                   # in channels per group
    n_groups = C_mid // gs_in
    gs_out = C_mid // n_groups            # out channels per group
    K = wd.shape[2]

    # conv1 weight (Cmid, Cimg+1, 1, 1): fold the channel-mean tap into the
    # image taps:  w_eff[:, c] = w1[:, c] + w1[:, Cimg] / Cimg
    w1_2d = w1[:, :, 0, 0]                                       # (Cmid, Cimg+1)
    w1_eff = w1_2d[:, :C_img] + w1_2d[:, C_img:] / float(C_img)  # (Cmid, Cimg)

    # grouped 5x5 weight (Cmid, Cmid/groups, 5, 5) -> dense block-diagonal
    # (Cmid, Cmid, 5, 5) -> fused im2col weight (Cmid, 25*Cmid), bf16.
    wd_full = jnp.zeros((C_mid, C_mid, K, K), wd.dtype)
    for g in range(n_groups):
        wd_full = wd_full.at[g * gs_out:(g + 1) * gs_out,
                             g * gs_in:(g + 1) * gs_in].set(
            wd[g * gs_out:(g + 1) * gs_out])
    wd_fused = jnp.transpose(wd_full, (0, 2, 3, 1)) \
        .reshape(C_mid, K * K * C_mid).astype(jnp.bfloat16)

    w2_2d = w2[:, :, 0, 0]                                       # (Cout, Cmid)

    b1_c = b1.reshape(C_mid, 1)
    bd_c = bd.reshape(C_mid, 1)
    b2_c = b2.reshape(C_out, 1)

    # flattened NCHW -> lane-dense (B, C, H*W); reshape is free (contiguous).
    img_flat = img_nchw.reshape(B, C_img, HW)

    kernel = functools.partial(_estimator_kernel, H=H, W=W, K=K)

    # TODO(synk): for large H*W, tile the pixel axis (grid (B, n_row_tiles))
    # with a 2-row halo so per-step VMEM stays within the per-generation
    # scoped limits (v7x: 64 MiB physical).  Whole-image blocks are far below
    # the limit at these sizes.
    fea_flat, map_flat = pl.pallas_call(
        kernel,
        out_shape=(jax.ShapeDtypeStruct((B, C_mid, HW), img_nchw.dtype),
                   jax.ShapeDtypeStruct((B, C_out, HW), img_nchw.dtype)),
        grid=(B,),
        in_specs=[
            pl.BlockSpec((1, C_img, HW), lambda b: (b, 0, 0)),
            pl.BlockSpec((C_mid, C_img), lambda b: (0, 0)),
            pl.BlockSpec((C_mid, 1), lambda b: (0, 0)),
            pl.BlockSpec((C_mid, K * K * C_mid), lambda b: (0, 0)),
            pl.BlockSpec((C_mid, 1), lambda b: (0, 0)),
            pl.BlockSpec((C_out, C_mid), lambda b: (0, 0)),
            pl.BlockSpec((C_out, 1), lambda b: (0, 0)),
        ],
        out_specs=(
            pl.BlockSpec((1, C_mid, HW), lambda b: (b, 0, 0)),
            pl.BlockSpec((1, C_out, HW), lambda b: (b, 0, 0)),
        ),
        compiler_params=pltpu.CompilerParams(
            dimension_semantics=("parallel",)),
    )(img_flat, w1_eff, b1_c, wd_fused, bd_c, w2_2d, b2_c)

    illu_fea = fea_flat.reshape(B, C_mid, H, W)
    illu_map = map_flat.reshape(B, C_out, H, W)
    return illu_fea, illu_map


def reference(img_nchw, params, n_groups=4):
    """Plain-JAX NCHW reference (matches the PyTorch module)."""
    w1, b1, wd, bd, w2, b2 = (params[k] for k in ("w1", "b1", "wd", "bd",
                                                  "w2", "b2"))
    dn = ("NCHW", "OIHW", "NCHW")
    mean_c = jnp.mean(img_nchw, axis=1, keepdims=True)
    inp = jnp.concatenate([img_nchw, mean_c], axis=1)
    x1 = jax.lax.conv_general_dilated(inp, w1, (1, 1), "VALID",
                                      dimension_numbers=dn) \
        + b1[None, :, None, None]
    fea = jax.lax.conv_general_dilated(x1, wd, (1, 1), ((2, 2), (2, 2)),
                                       dimension_numbers=dn,
                                       feature_group_count=n_groups) \
        + bd[None, :, None, None]
    imap = jax.lax.conv_general_dilated(fea, w2, (1, 1), "VALID",
                                        dimension_numbers=dn) \
        + b2[None, :, None, None]
    return fea, imap


if __name__ == "__main__":
    # Small deterministic config: batch=2, img channels=3, H=W=16, Cmid=16.
    B, C_IMG, H, W = 2, 3, 16, 16
    N_FEA_MIDDLE, N_FEA_IN, N_FEA_OUT = 16, 4, 3
    GROUPS = N_FEA_IN  # as in the PyTorch module

    key = jax.random.PRNGKey(0)
    k_img, k1, k2, k3, k4, k5, k6 = jax.random.split(key, 7)

    img = jax.random.normal(k_img, (B, C_IMG, H, W), jnp.float32)

    params = {
        "w1": 0.1 * jax.random.normal(k1, (N_FEA_MIDDLE, N_FEA_IN, 1, 1),
                                      jnp.float32),
        "b1": 0.1 * jax.random.normal(k2, (N_FEA_MIDDLE,), jnp.float32),
        "wd": 0.1 * jax.random.normal(
            k3, (N_FEA_MIDDLE, N_FEA_MIDDLE // GROUPS, 5, 5), jnp.float32),
        "bd": 0.1 * jax.random.normal(k4, (N_FEA_MIDDLE,), jnp.float32),
        "w2": 0.1 * jax.random.normal(k5, (N_FEA_OUT, N_FEA_MIDDLE, 1, 1),
                                      jnp.float32),
        "b2": 0.1 * jax.random.normal(k6, (N_FEA_OUT,), jnp.float32),
    }

    run = jax.jit(illumination_estimator)
    illu_fea, illu_map = run(img, params)
    jax.block_until_ready((illu_fea, illu_map))

    fea_ref, map_ref = reference(img, params, n_groups=GROUPS)
    # bf16 im2col / fused weight (f32 accumulation) -> slightly looser tol.
    np.testing.assert_allclose(np.asarray(illu_fea), np.asarray(fea_ref),
                               rtol=2e-2, atol=2e-2)
    np.testing.assert_allclose(np.asarray(illu_map), np.asarray(map_ref),
                               rtol=2e-2, atol=2e-2)
    assert illu_fea.shape == (B, N_FEA_MIDDLE, H, W)
    assert illu_map.shape == (B, N_FEA_OUT, H, W)

    print("KERNEL_OK")
</pallas_src>

<mosaic_0001>
module attributes {stable_mosaic.version = 11 : i64} {
  func.func @_estimator_kernel(%arg0: i32, %arg1: memref<1x3x256xf32, #tpu.memory_space<vmem>>, %arg2: memref<16x3xf32, #tpu.memory_space<vmem>>, %arg3: memref<16x1xf32, #tpu.memory_space<vmem>>, %arg4: memref<16x400xbf16, #tpu.memory_space<vmem>>, %arg5: memref<16x1xf32, #tpu.memory_space<vmem>>, %arg6: memref<3x16xf32, #tpu.memory_space<vmem>>, %arg7: memref<3x1xf32, #tpu.memory_space<vmem>>, %arg8: memref<1x16x256xf32, #tpu.memory_space<vmem>>, %arg9: memref<1x3x256xf32, #tpu.memory_space<vmem>>) attributes {dimension_semantics = [#tpu.dimension_semantics<parallel>], iteration_bounds = array<i64: 2>, scalar_prefetch = 0 : i64, scratch_operands = 0 : i64, tpu.core_type = #tpu.core_type<tc>, window_params = [{transform_indices = @transform_0, window_bounds = array<i64: 1, 3, 256>}, {pipeline_mode = #tpu.pipeline_mode<synchronous>, transform_indices = @transform_1, window_bounds = array<i64: 16, 3>}, {pipeline_mode = #tpu.pipeline_mode<synchronous>, transform_indices = @transform_2, window_bounds = array<i64: 16, 1>}, {pipeline_mode = #tpu.pipeline_mode<synchronous>, transform_indices = @transform_3, window_bounds = array<i64: 16, 400>}, {pipeline_mode = #tpu.pipeline_mode<synchronous>, transform_indices = @transform_4, window_bounds = array<i64: 16, 1>}, {pipeline_mode = #tpu.pipeline_mode<synchronous>, transform_indices = @transform_5, window_bounds = array<i64: 3, 16>}, {pipeline_mode = #tpu.pipeline_mode<synchronous>, transform_indices = @transform_6, window_bounds = array<i64: 3, 1>}, {transform_indices = @transform_7, window_bounds = array<i64: 1, 16, 256>}, {transform_indices = @transform_8, window_bounds = array<i64: 1, 3, 256>}]} {
    %c0 = arith.constant 0 : index
    %c0_0 = arith.constant 0 : index
    %c0_1 = arith.constant 0 : index
    %0 = vector.load %arg1[%c0, %c0_0, %c0_1] : memref<1x3x256xf32, #tpu.memory_space<vmem>>, vector<1x3x256xf32>
    %1 = vector.shape_cast %0 : vector<1x3x256xf32> to vector<3x256xf32>
    %c0_2 = arith.constant 0 : index
    %c0_3 = arith.constant 0 : index
    %2 = vector.load %arg2[%c0_2, %c0_3] : memref<16x3xf32, #tpu.memory_space<vmem>>, vector<16x3xf32>
    %cst = arith.constant dense<0.000000e+00> : vector<16x256xf32>
    %3 = tpu.matmul %2, %1, %cst {dimension_numbers = #tpu.dot_dimension_numbers<[1], [0], [0], [1], [0, 0, 1, 1], [], []>} : vector<16x3xf32>, vector<3x256xf32>, vector<16x256xf32> -> vector<16x256xf32>
    %c0_4 = arith.constant 0 : index
    %c0_5 = arith.constant 0 : index
    %4 = vector.load %arg3[%c0_4, %c0_5] : memref<16x1xf32, #tpu.memory_space<vmem>>, vector<16x1xf32>
    %5 = vector.broadcast %4 : vector<16x1xf32> to vector<16x256xf32>
    %6 = arith.addf %3, %5 : vector<16x256xf32>
    %7 = arith.truncf %6 : vector<16x256xf32> to vector<16x256xbf16>
    %8 = tpu.iota {dimensions = array<i32: 1>} : vector<1x256xi32>
    %c16_i32 = arith.constant 16 : i32
    %c0_i32 = arith.constant 0 : i32
    %9 = arith.cmpi eq, %c16_i32, %c0_i32 : i32
    %c1_i32 = arith.constant 1 : i32
    %10 = arith.select %9, %c1_i32, %c16_i32 : i32
    %11 = vector.broadcast %10 : i32 to vector<1x256xi32>
    %12 = arith.remsi %8, %11 : vector<1x256xi32>
    %c0_i32_6 = arith.constant 0 : i32
    %13 = vector.broadcast %c0_i32_6 : i32 to vector<1x256xi32>
    %14 = arith.cmpi ne, %12, %13 : vector<1x256xi32>
    %c0_i32_7 = arith.constant 0 : i32
    %15 = vector.broadcast %c0_i32_7 : i32 to vector<1x256xi32>
    %16 = arith.cmpi slt, %12, %15 : vector<1x256xi32>
    %c0_i32_8 = arith.constant 0 : i32
    %17 = arith.cmpi slt, %10, %c0_i32_8 : i32
    %18 = vector.broadcast %17 : i1 to vector<1x256xi1>
    %19 = vector.broadcast %18 : vector<1x256xi1> to vector<1x256xi1>
    %20 = arith.xori %16, %19 : vector<1x256xi1>
    %21 = arith.andi %20, %14 : vector<1x256xi1>
    %22 = vector.broadcast %10 : i32 to vector<1x256xi32>
    %23 = arith.addi %12, %22 : vector<1x256xi32>
    %24 = arith.select %21, %23, %12 : vector<1x256xi1>, vector<1x256xi32>
    %cst_9 = arith.constant 0.000000e+00 : bf16
    %25 = vector.broadcast %cst_9 : bf16 to vector<16x2xbf16>
    %26 = vector.extract_strided_slice %7 {offsets = [0, 0], sizes = [16, 254], strides = [1, 1]} : vector<16x256xbf16> to vector<16x254xbf16>
    %27 = tpu.concatenate %25, %26 in 1 : vector<16x2xbf16>, vector<16x254xbf16> -> vector<16x256xbf16>
    %c-2_i32 = arith.constant -2 : i32
    %28 = vector.broadcast %c-2_i32 : i32 to vector<1x256xi32>
    %29 = arith.addi %24, %28 : vector<1x256xi32>
    %c0_i32_10 = arith.constant 0 : i32
    %30 = vector.broadcast %c0_i32_10 : i32 to vector<1x256xi32>
    %31 = arith.cmpi sge, %29, %30 : vector<1x256xi32>
    %c-2_i32_11 = arith.constant -2 : i32
    %32 = vector.broadcast %c-2_i32_11 : i32 to vector<1x256xi32>
    %33 = arith.addi %24, %32 : vector<1x256xi32>
    %c16_i32_12 = arith.constant 16 : i32
    %34 = vector.broadcast %c16_i32_12 : i32 to vector<1x256xi32>
    %35 = arith.cmpi slt, %33, %34 : vector<1x256xi32>
    %36 = arith.andi %31, %35 : vector<1x256xi1>
    %cst_13 = arith.constant 0.000000e+00 : bf16
    %37 = vector.broadcast %cst_13 : bf16 to vector<16x256xbf16>
    %38 = vector.shape_cast %36 : vector<1x256xi1> to vector<1x256xi1>
    %39 = vector.broadcast %38 : vector<1x256xi1> to vector<16x256xi1>
    %40 = arith.select %39, %27, %37 : vector<16x256xi1>, vector<16x256xbf16>
    %cst_14 = arith.constant 0.000000e+00 : bf16
    %41 = vector.broadcast %cst_14 : bf16 to vector<16x1xbf16>
    %42 = vector.extract_strided_slice %7 {offsets = [0, 0], sizes = [16, 255], strides = [1, 1]} : vector<16x256xbf16> to vector<16x255xbf16>
    %43 = tpu.concatenate %41, %42 in 1 : vector<16x1xbf16>, vector<16x255xbf16> -> vector<16x256xbf16>
    %c-1_i32 = arith.constant -1 : i32
    %44 = vector.broadcast %c-1_i32 : i32 to vector<1x256xi32>
    %45 = arith.addi %24, %44 : vector<1x256xi32>
    %c0_i32_15 = arith.constant 0 : i32
    %46 = vector.broadcast %c0_i32_15 : i32 to vector<1x256xi32>
    %47 = arith.cmpi sge, %45, %46 : vector<1x256xi32>
    %c-1_i32_16 = arith.constant -1 : i32
    %48 = vector.broadcast %c-1_i32_16 : i32 to vector<1x256xi32>
    %49 = arith.addi %24, %48 : vector<1x256xi32>
    %c16_i32_17 = arith.constant 16 : i32
    %50 = vector.broadcast %c16_i32_17 : i32 to vector<1x256xi32>
    %51 = arith.cmpi slt, %49, %50 : vector<1x256xi32>
    %52 = arith.andi %47, %51 : vector<1x256xi1>
    %cst_18 = arith.constant 0.000000e+00 : bf16
    %53 = vector.broadcast %cst_18 : bf16 to vector<16x256xbf16>
    %54 = vector.shape_cast %52 : vector<1x256xi1> to vector<1x256xi1>
    %55 = vector.broadcast %54 : vector<1x256xi1> to vector<16x256xi1>
    %56 = arith.select %55, %43, %53 : vector<16x256xi1>, vector<16x256xbf16>
    %cst_19 = arith.constant 0.000000e+00 : bf16
    %57 = vector.broadcast %cst_19 : bf16 to vector<16x1xbf16>
    %58 = vector.extract_strided_slice %7 {offsets = [0, 1], sizes = [16, 255], strides = [1, 1]} : vector<16x256xbf16> to vector<16x255xbf16>
    %59 = tpu.concatenate %58, %57 in 1 : vector<16x255xbf16>, vector<16x1xbf16> -> vector<16x256xbf16>
    %c1_i32_20 = arith.constant 1 : i32
    %60 = vector.broadcast %c1_i32_20 : i32 to vector<1x256xi32>
    %61 = arith.addi %24, %60 : vector<1x256xi32>
    %c0_i32_21 = arith.constant 0 : i32
    %62 = vector.broadcast %c0_i32_21 : i32 to vector<1x256xi32>
    %63 = arith.cmpi sge, %61, %62 : vector<1x256xi32>
    %c1_i32_22 = arith.constant 1 : i32
    %64 = vector.broadcast %c1_i32_22 : i32 to vector<1x256xi32>
    %65 = arith.addi %24, %64 : vector<1x256xi32>
    %c16_i32_23 = arith.constant 16 : i32
    %66 = vector.broadcast %c16_i32_23 : i32 to vector<1x256xi32>
    %67 = arith.cmpi slt, %65, %66 : vector<1x256xi32>
    %68 = arith.andi %63, %67 : vector<1x256xi1>
    %cst_24 = arith.constant 0.000000e+00 : bf16
    %69 = vector.broadcast %cst_24 : bf16 to vector<16x256xbf16>
    %70 = vector.shape_cast %68 : vector<1x256xi1> to vector<1x256xi1>
    %71 = vector.broadcast %70 : vector<1x256xi1> to vector<16x256xi1>
    %72 = arith.select %71, %59, %69 : vector<16x256xi1>, vector<16x256xbf16>
    %cst_25 = arith.constant 0.000000e+00 : bf16
    %73 = vector.broadcast %cst_25 : bf16 to vector<16x2xbf16>
    %74 = vector.extract_strided_slice %7 {offsets = [0, 2], sizes = [16, 254], strides = [1, 1]} : vector<16x256xbf16> to vector<16x254xbf16>
    %75 = tpu.concatenate %74, %73 in 1 : vector<16x254xbf16>, vector<16x2xbf16> -> vector<16x256xbf16>
    %c2_i32 = arith.constant 2 : i32
    %76 = vector.broadcast %c2_i32 : i32 to vector<1x256xi32>
    %77 = arith.addi %24, %76 : vector<1x256xi32>
    %c0_i32_26 = arith.constant 0 : i32
    %78 = vector.broadcast %c0_i32_26 : i32 to vector<1x256xi32>
    %79 = arith.cmpi sge, %77, %78 : vector<1x256xi32>
    %c2_i32_27 = arith.constant 2 : i32
    %80 = vector.broadcast %c2_i32_27 : i32 to vector<1x256xi32>
    %81 = arith.addi %24, %80 : vector<1x256xi32>
    %c16_i32_28 = arith.constant 16 : i32
    %82 = vector.broadcast %c16_i32_28 : i32 to vector<1x256xi32>
    %83 = arith.cmpi slt, %81, %82 : vector<1x256xi32>
    %84 = arith.andi %79, %83 : vector<1x256xi1>
    %cst_29 = arith.constant 0.000000e+00 : bf16
    %85 = vector.broadcast %cst_29 : bf16 to vector<16x256xbf16>
    %86 = vector.shape_cast %84 : vector<1x256xi1> to vector<1x256xi1>
    %87 = vector.broadcast %86 : vector<1x256xi1> to vector<16x256xi1>
    %88 = arith.select %87, %75, %85 : vector<16x256xi1>, vector<16x256xbf16>
    %cst_30 = arith.constant 0.000000e+00 : bf16
    %89 = vector.broadcast %cst_30 : bf16 to vector<16x32xbf16>
    %90 = vector.extract_strided_slice %40 {offsets = [0, 0], sizes = [16, 224], strides = [1, 1]} : vector<16x256xbf16> to vector<16x224xbf16>
    %91 = tpu.concatenate %89, %90 in 1 : vector<16x32xbf16>, vector<16x224xbf16> -> vector<16x256xbf16>
    %cst_31 = arith.constant 0.000000e+00 : bf16
    %92 = vector.broadcast %cst_31 : bf16 to vector<16x32xbf16>
    %93 = vector.extract_strided_slice %56 {offsets = [0, 0], sizes = [16, 224], strides = [1, 1]} : vector<16x256xbf16> to vector<16x224xbf16>
    %94 = tpu.concatenate %92, %93 in 1 : vector<16x32xbf16>, vector<16x224xbf16> -> vector<16x256xbf16>
    %cst_32 = arith.constant 0.000000e+00 : bf16
    %95 = vector.broadcast %cst_32 : bf16 to vector<16x32xbf16>
    %96 = vector.extract_strided_slice %7 {offsets = [0, 0], sizes = [16, 224], strides = [1, 1]} : vector<16x256xbf16> to vector<16x224xbf16>
    %97 = tpu.concatenate %95, %96 in 1 : vector<16x32xbf16>, vector<16x224xbf16> -> vector<16x256xbf16>
    %cst_33 = arith.constant 0.000000e+00 : bf16
    %98 = vector.broadcast %cst_33 : bf16 to vector<16x32xbf16>
    %99 = vector.extract_strided_slice %72 {offsets = [0, 0], sizes = [16, 224], strides = [1, 1]} : vector<16x256xbf16> to vector<16x224xbf16>
    %100 = tpu.concatenate %98, %99 in 1 : vector<16x32xbf16>, vector<16x224xbf16> -> vector<16x256xbf16>
    %cst_34 = arith.constant 0.000000e+00 : bf16
    %101 = vector.broadcast %cst_34 : bf16 to vector<16x32xbf16>
    %102 = vector.extract_strided_slice %88 {offsets = [0, 0], sizes = [16, 224], strides = [1, 1]} : vector<16x256xbf16> to vector<16x224xbf16>
    %103 = tpu.concatenate %101, %102 in 1 : vector<16x32xbf16>, vector<16x224xbf16> -> vector<16x256xbf16>
    %cst_35 = arith.constant 0.000000e+00 : bf16
    %104 = vector.broadcast %cst_35 : bf16 to vector<16x16xbf16>
    %105 = vector.extract_strided_slice %40 {offsets = [0, 0], sizes = [16, 240], strides = [1, 1]} : vector<16x256xbf16> to vector<16x240xbf16>
    %106 = tpu.concatenate %104, %105 in 1 : vector<16x16xbf16>, vector<16x240xbf16> -> vector<16x256xbf16>
    %cst_36 = arith.constant 0.000000e+00 : bf16
    %107 = vector.broadcast %cst_36 : bf16 to vector<16x16xbf16>
    %108 = vector.extract_strided_slice %56 {offsets = [0, 0], sizes = [16, 240], strides = [1, 1]} : vector<16x256xbf16> to vector<16x240xbf16>
    %109 = tpu.concatenate %107, %108 in 1 : vector<16x16xbf16>, vector<16x240xbf16> -> vector<16x256xbf16>
    %cst_37 = arith.constant 0.000000e+00 : bf16
    %110 = vector.broadcast %cst_37 : bf16 to vector<16x16xbf16>
    %111 = vector.extract_strided_slice %7 {offsets = [0, 0], sizes = [16, 240], strides = [1, 1]} : vector<16x256xbf16> to vector<16x240xbf16>
    %112 = tpu.concatenate %110, %111 in 1 : vector<16x16xbf16>, vector<16x240xbf16> -> vector<16x256xbf16>
    %cst_38 = arith.constant 0.000000e+00 : bf16
    %113 = vector.broadcast %cst_38 : bf16 to vector<16x16xbf16>
    %114 = vector.extract_strided_slice %72 {offsets = [0, 0], sizes = [16, 240], strides = [1, 1]} : vector<16x256xbf16> to vector<16x240xbf16>
    %115 = tpu.concatenate %113, %114 in 1 : vector<16x16xbf16>, vector<16x240xbf16> -> vector<16x256xbf16>
    %cst_39 = arith.constant 0.000000e+00 : bf16
    %116 = vector.broadcast %cst_39 : bf16 to vector<16x16xbf16>
    %117 = vector.extract_strided_slice %88 {offsets = [0, 0], sizes = [16, 240], strides = [1, 1]} : vector<16x256xbf16> to vector<16x240xbf16>
    %118 = tpu.concatenate %116, %117 in 1 : vector<16x16xbf16>, vector<16x240xbf16> -> vector<16x256xbf16>
    %cst_40 = arith.constant 0.000000e+00 : bf16
    %119 = vector.broadcast %cst_40 : bf16 to vector<16x16xbf16>
    %120 = vector.extract_strided_slice %40 {offsets = [0, 16], sizes = [16, 240], strides = [1, 1]} : vector<16x256xbf16> to vector<16x240xbf16>
    %121 = tpu.concatenate %120, %119 in 1 : vector<16x240xbf16>, vector<16x16xbf16> -> vector<16x256xbf16>
    %cst_41 = arith.constant 0.000000e+00 : bf16
    %122 = vector.broadcast %cst_41 : bf16 to vector<16x16xbf16>
    %123 = vector.extract_strided_slice %56 {offsets = [0, 16], sizes = [16, 240], strides = [1, 1]} : vector<16x256xbf16> to vector<16x240xbf16>
    %124 = tpu.concatenate %123, %122 in 1 : vector<16x240xbf16>, vector<16x16xbf16> -> vector<16x256xbf16>
    %cst_42 = arith.constant 0.000000e+00 : bf16
    %125 = vector.broadcast %cst_42 : bf16 to vector<16x16xbf16>
    %126 = vector.extract_strided_slice %7 {offsets = [0, 16], sizes = [16, 240], strides = [1, 1]} : vector<16x256xbf16> to vector<16x240xbf16>
    %127 = tpu.concatenate %126, %125 in 1 : vector<16x240xbf16>, vector<16x16xbf16> -> vector<16x256xbf16>
    %cst_43 = arith.constant 0.000000e+00 : bf16
    %128 = vector.broadcast %cst_43 : bf16 to vector<16x16xbf16>
    %129 = vector.extract_strided_slice %72 {offsets = [0, 16], sizes = [16, 240], strides = [1, 1]} : vector<16x256xbf16> to vector<16x240xbf16>
    %130 = tpu.concatenate %129, %128 in 1 : vector<16x240xbf16>, vector<16x16xbf16> -> vector<16x256xbf16>
    %cst_44 = arith.constant 0.000000e+00 : bf16
    %131 = vector.broadcast %cst_44 : bf16 to vector<16x16xbf16>
    %132 = vector.extract_strided_slice %88 {offsets = [0, 16], sizes = [16, 240], strides = [1, 1]} : vector<16x256xbf16> to vector<16x240xbf16>
    %133 = tpu.concatenate %132, %131 in 1 : vector<16x240xbf16>, vector<16x16xbf16> -> vector<16x256xbf16>
    %cst_45 = arith.constant 0.000000e+00 : bf16
    %134 = vector.broadcast %cst_45 : bf16 to vector<16x32xbf16>
    %135 = vector.extract_strided_slice %40 {offsets = [0, 32], sizes = [16, 224], strides = [1, 1]} : vector<16x256xbf16> to vector<16x224xbf16>
    %136 = tpu.concatenate %135, %134 in 1 : vector<16x224xbf16>, vector<16x32xbf16> -> vector<16x256xbf16>
    %cst_46 = arith.constant 0.000000e+00 : bf16
    %137 = vector.broadcast %cst_46 : bf16 to vector<16x32xbf16>
    %138 = vector.extract_strided_slice %56 {offsets = [0, 32], sizes = [16, 224], strides = [1, 1]} : vector<16x256xbf16> to vector<16x224xbf16>
    %139 = tpu.concatenate %138, %137 in 1 : vector<16x224xbf16>, vector<16x32xbf16> -> vector<16x256xbf16>
    %cst_47 = arith.constant 0.000000e+00 : bf16
    %140 = vector.broadcast %cst_47 : bf16 to vector<16x32xbf16>
    %141 = vector.extract_strided_slice %7 {offsets = [0, 32], sizes = [16, 224], strides = [1, 1]} : vector<16x256xbf16> to vector<16x224xbf16>
    %142 = tpu.concatenate %141, %140 in 1 : vector<16x224xbf16>, vector<16x32xbf16> -> vector<16x256xbf16>
    %cst_48 = arith.constant 0.000000e+00 : bf16
    %143 = vector.broadcast %cst_48 : bf16 to vector<16x32xbf16>
    %144 = vector.extract_strided_slice %72 {offsets = [0, 32], sizes = [16, 224], strides = [1, 1]} : vector<16x256xbf16> to vector<16x224xbf16>
    %145 = tpu.concatenate %144, %143 in 1 : vector<16x224xbf16>, vector<16x32xbf16> -> vector<16x256xbf16>
    %cst_49 = arith.constant 0.000000e+00 : bf16
    %146 = vector.broadcast %cst_49 : bf16 to vector<16x32xbf16>
    %147 = vector.extract_strided_slice %88 {offsets = [0, 32], sizes = [16, 224], strides = [1, 1]} : vector<16x256xbf16> to vector<16x224xbf16>
    %148 = tpu.concatenate %147, %146 in 1 : vector<16x224xbf16>, vector<16x32xbf16> -> vector<16x256xbf16>
    %149 = tpu.concatenate %91, %94, %97, %100, %103, %106, %109, %112, %115, %118, %40, %56, %7, %72, %88, %121 in 0 : vector<16x256xbf16>, vector<16x256xbf16>, vector<16x256xbf16>, vector<16x256xbf16>, vector<16x256xbf16>, vector<16x256xbf16>, vector<16x256xbf16>, vector<16x256xbf16>, vector<16x256xbf16>, vector<16x256xbf16>, vector<16x256xbf16>, vector<16x256xbf16>, vector<16x256xbf16>, vector<16x256xbf16>, vector<16x256xbf16>, vector<16x256xbf16> -> vector<256x256xbf16>
    %150 = tpu.concatenate %124, %127, %130, %133, %136, %139, %142, %145, %148 in 0 : vector<16x256xbf16>, vector<16x256xbf16>, vector<16x256xbf16>, vector<16x256xbf16>, vector<16x256xbf16>, vector<16x256xbf16>, vector<16x256xbf16>, vector<16x256xbf16>, vector<16x256xbf16> -> vector<144x256xbf16>
    %151 = tpu.concatenate %149, %150 in 0 : vector<256x256xbf16>, vector<144x256xbf16> -> vector<400x256xbf16>
    %c0_50 = arith.constant 0 : index
    %c0_51 = arith.constant 0 : index
    %152 = vector.load %arg4[%c0_50, %c0_51] : memref<16x400xbf16, #tpu.memory_space<vmem>>, vector<16x400xbf16>
    %cst_52 = arith.constant dense<0.000000e+00> : vector<16x256xf32>
    %153 = tpu.matmul %152, %151, %cst_52 {dimension_numbers = #tpu.dot_dimension_numbers<[1], [0], [0], [1], [0, 0, 1, 1], [], []>} : vector<16x400xbf16>, vector<400x256xbf16>, vector<16x256xf32> -> vector<16x256xf32>
    %c0_53 = arith.constant 0 : index
    %c0_54 = arith.constant 0 : index
    %154 = vector.load %arg5[%c0_53, %c0_54] : memref<16x1xf32, #tpu.memory_space<vmem>>, vector<16x1xf32>
    %155 = vector.broadcast %154 : vector<16x1xf32> to vector<16x256xf32>
    %156 = arith.addf %153, %155 : vector<16x256xf32>
    %c0_55 = arith.constant 0 : index
    %c0_56 = arith.constant 0 : index
    %157 = vector.load %arg6[%c0_55, %c0_56] : memref<3x16xf32, #tpu.memory_space<vmem>>, vector<3x16xf32>
    %cst_57 = arith.constant dense<0.000000e+00> : vector<3x256xf32>
    %158 = tpu.matmul %157, %156, %cst_57 {dimension_numbers = #tpu.dot_dimension_numbers<[1], [0], [0], [1], [0, 0, 1, 1], [], []>} : vector<3x16xf32>, vector<16x256xf32>, vector<3x256xf32> -> vector<3x256xf32>
    %c0_58 = arith.constant 0 : index
    %c0_59 = arith.constant 0 : index
    %159 = vector.load %arg7[%c0_58, %c0_59] : memref<3x1xf32, #tpu.memory_space<vmem>>, vector<3x1xf32>
    %160 = vector.broadcast %159 : vector<3x1xf32> to vector<3x256xf32>
    %161 = arith.addf %158, %160 : vector<3x256xf32>
    %c0_60 = arith.constant 0 : index
    %c0_61 = arith.constant 0 : index
    %c0_62 = arith.constant 0 : index
    %162 = vector.load %arg8[%c0_60, %c0_61, %c0_62] : memref<1x16x256xf32, #tpu.memory_space<vmem>>, vector<1x16x256xf32>
    %163 = vector.shape_cast %162 : vector<1x16x256xf32> to vector<16x256xf32>
    %164 = vector.shape_cast %156 : vector<16x256xf32> to vector<1x16x256xf32>
    tpu.vector_store %arg8[%c0_60, %c0_61, %c0_62], %164 {strides = array<i32>} : memref<1x16x256xf32, #tpu.memory_space<vmem>>, vector<1x16x256xf32>,
    %c0_63 = arith.constant 0 : index
    %c0_64 = arith.constant 0 : index
    %c0_65 = arith.constant 0 : index
    %165 = vector.load %arg9[%c0_63, %c0_64, %c0_65] : memref<1x3x256xf32, #tpu.memory_space<vmem>>, vector<1x3x256xf32>
    %166 = vector.shape_cast %165 : vector<1x3x256xf32> to vector<3x256xf32>
    %167 = vector.shape_cast %161 : vector<3x256xf32> to vector<1x3x256xf32>
    tpu.vector_store %arg9[%c0_63, %c0_64, %c0_65], %167 {strides = array<i32>} : memref<1x3x256xf32, #tpu.memory_space<vmem>>, vector<1x3x256xf32>,
    return
  }
  func.func @transform_0(%arg0: i32) -> (i32, i32, i32) {
    %c0_i32 = arith.constant 0 : i32
    %c0_i32_0 = arith.constant 0 : i32
    %c0_i32_1 = arith.constant 0 : i32
    return %arg0, %c0_i32, %c0_i32_0 : i32, i32, i32
  }
  func.func @transform_1(%arg0: i32) -> (i32, i32) {
    %c0_i32 = arith.constant 0 : i32
    %c0_i32_0 = arith.constant 0 : i32
    %c0_i32_1 = arith.constant 0 : i32
    return %c0_i32, %c0_i32_0 : i32, i32
  }
  func.func @transform_2(%arg0: i32) -> (i32, i32) {
    %c0_i32 = arith.constant 0 : i32
    %c0_i32_0 = arith.constant 0 : i32
    %c0_i32_1 = arith.constant 0 : i32
    return %c0_i32, %c0_i32_0 : i32, i32
  }
  func.func @transform_3(%arg0: i32) -> (i32, i32) {
    %c0_i32 = arith.constant 0 : i32
    %c0_i32_0 = arith.constant 0 : i32
    %c0_i32_1 = arith.constant 0 : i32
    return %c0_i32, %c0_i32_0 : i32, i32
  }
  func.func @transform_4(%arg0: i32) -> (i32, i32) {
    %c0_i32 = arith.constant 0 : i32
    %c0_i32_0 = arith.constant 0 : i32
    %c0_i32_1 = arith.constant 0 : i32
    return %c0_i32, %c0_i32_0 : i32, i32
  }
  func.func @transform_5(%arg0: i32) -> (i32, i32) {
    %c0_i32 = arith.constant 0 : i32
    %c0_i32_0 = arith.constant 0 : i32
    %c0_i32_1 = arith.constant 0 : i32
    return %c0_i32, %c0_i32_0 : i32, i32
  }
  func.func @transform_6(%arg0: i32) -> (i32, i32) {
    %c0_i32 = arith.constant 0 : i32
    %c0_i32_0 = arith.constant 0 : i32
    %c0_i32_1 = arith.constant 0 : i32
    return %c0_i32, %c0_i32_0 : i32, i32
  }
  func.func @transform_7(%arg0: i32) -> (i32, i32, i32) {
    %c0_i32 = arith.constant 0 : i32
    %c0_i32_0 = arith.constant 0 : i32
    %c0_i32_1 = arith.constant 0 : i32
    return %arg0, %c0_i32, %c0_i32_0 : i32, i32, i32
  }
  func.func @transform_8(%arg0: i32) -> (i32, i32, i32) {
    %c0_i32 = arith.constant 0 : i32
    %c0_i32_0 = arith.constant 0 : i32
    %c0_i32_1 = arith.constant 0 : i32
    return %arg0, %c0_i32, %c0_i32_0 : i32, i32, i32
  }
}

</mosaic_0001>

<bundles_post_ra>
// kernel: illumination_estimator.1
= control target key start
LH: loop header
LB: loop body
LE: loop exit
PB: predicated region body
PF: predicated region fallthrough
CT: control target
= control target key end

     0   :  { %s1256_s27 = smov 0   ;;  %s1535_s0 = inlined_call_operand.vmem [shape: f32[2,3,256], index: 0, kind: input, shape index: {}]   ;;  %s1536_s1 = inlined_call_operand.vmem [shape: f32[16,3], index: 1, kind: input, shape index: {}]   ;;  %s1537_s2 = inlined_call_operand.vmem [shape: f32[16,1], index: 2, kind: input, shape index: {}]   ;;  %s1538_s3 = inlined_call_operand.vmem [shape: bf16[16,400], index: 3, kind: input, shape index: {}]   ;;  %s1539_s4 = inlined_call_operand.vmem [shape: f32[16,1], index: 4, kind: input, shape index: {}]   ;;  %s1540_s5 = inlined_call_operand.vmem [shape: f32[3,16], index: 5, kind: input, shape index: {}]   ;;  %s1541_s6 = inlined_call_operand.vmem [shape: f32[3,1], index: 6, kind: input, shape index: {}]   ;;  %s1542_s7 = inlined_call_operand.vmem [shape: f32[2,16,256], index: 7, kind: output, shape index: {0}]   ;;  %s1543_s8 = inlined_call_operand.vmem [shape: f32[2,3,256], index: 8, kind: output, shape index: {1}]  }
   0x1 LB: > { %s1106_s28 = sadd.s32 4294967295, %s1199_s27   ;;  %p1110_p0 = scmp.ge.s32.totalorder %s1199_s27, 1  ;;  %s1199_s27 = sphi %s1256_s27, %s19_s27  }
   0x2   : > { %p265_p1 = scmp.lt.s32.totalorder %s1199_s27, 3 }
   0x4   : > { %p266_p2 = pnand %p1110_p0, %p265_p1 }
   0x5   : > { %p304_p3 = scmp.lt.s32.totalorder (!%p266_p2), %s1106_s28, 1  ;;  %s1203_s19 = smov (!%p266_p2), 2  }
   0x6   : > { %269 = sbr.rel (%p266_p2) target bundleno = 933 (0x3a5), region = 48  ;;  %s1204_s20 = smov (!%p266_p2), 1  }
   0x7   : > { %s1205_s21 = smov (!%p266_p2), 126   ;;  %s1206_s22 = smov (!%p266_p2), 127  }
   0x8   : > { %s1207_s23 = smov (!%p266_p2), 16   ;;  %s1208_s24 = smov (!%p266_p2), 32  }
   0x9   : > { %s1209_s25 = smov (!%p266_p2), 96   ;;  %s1210_s26 = smov (!%p266_p2), 112  }
   0xb   : > { %v1201_v0 = vmov 0.0   ;;  %v325_v1 = vld [vmem:[%s1537_s2] sm:$0xff]  ;;  %s1557_s28 = smov (!%p304_p3, %s1106_s28), 1  ;;  %v1202_v2 = vmov 0   ;;  %v326_v3 = vld [vmem:[%s1537_s2 + $0x8] sm:$0xff]  ;;  %vm346_vm0 = vcmask 1042432   ;;  %v430_v20 = vlaneseq }
   0xc   : > { %415 = vmatprep.mubr.f32.mxu0 %v1201_v0  ;;  %1184 = vset.pattern.permute.xlu0 %v1202_v2  ;;  %s1163_s9 = sshll.u32 %s1557_s28, 3  ;;  %v323_v6 = vld [vmem:[%s1536_s1] sm:$0xff]  ;;  %vm339_vm1 = vcmask 23552   ;;  %v324_v7 = vld [vmem:[%s1536_s1 + $0x8] sm:$0xff]  ;;  %vm501_vm8 = vcmask 7168   ;;  %vm463_vm12 = vcmask 15360  }
   0xd   : > { %1185 = vset.pattern.permute.xlu1 %v1202_v2  ;;  %329 = vperm.xlu0 %1184, %v325_v1   ;;  %s308_s14 = scalar_lea.vmem %s1535_s0, %s1163_s9  ;;  %v431_v21 = vand.u32 127, %v430_v20  ;;  %v486_v29 = vshrl.u32 %v430_v20, 7  ;;  %v1192_v20 = vld [vmem:[%s1538_s3 + $0xc] ss:$16 sps:$4 sm:$0xff]   ;;  %s318_s11 = scalar_lea.vmem %s1543_s8, %s1163_s9 }
   0xe   : > { %v322_v4 = vld [vmem:[%s308_s14] sm:$0x77] }
   0xf   : > { %v338_v5 = vcombine.high %v322_v4, %v322_v4  ;;  %v432_v22 = vadd.s32 128, %v431_v21  ;;  %v437_v23 = vand.u32 15, %v431_v21  ;;  %v1308_v30 = vsub.s32 0, %v486_v29  ;;  %v809_v21 = vld [vmem:[%s1539_s4 + $0x8] sm:$0xff] }
  0x10   : > { %v491_v35 = vsub.s32 4, %v486_v29 }
  0x11   : > { %334 = vperm.xlu0 %1184, %v326_v3   ;;  %1117 = vmatprep.subr.msk.mxu0 %vm346_vm0, %v338_v5  ;;  %v444_v24 = vand.u32 15, %v432_v22  ;;  %v508_v25 = vadd.s32 4294967295, %v437_v23  ;;  %v471_v27 = vadd.s32 4294967294, %v437_v23  ;;  %v582_v32 = vadd.s32 2, %v437_v23  ;;  %v929_v22 = vld [vmem:[%s1541_s6] sm:$0x7] }
  0x12   : > { %1118 = vmatpush1.msk.msra.mxu0 %vm346_vm0, %v322_v4  ;;  %v545_v43 = vadd.s32 1, %v437_v23  ;;  %v808_v23 = vld [vmem:[%s1539_s4] sm:$0xff] }
  0x13   : > { %1119 = vmatmul.mubr.msk.f32.vlgmr.msra.gmra.mxu0 %vm339_vm1, %v323_v6  ;;  %v509_v26 = vadd.s32 4294967295, %v444_v24  ;;  %v472_v28 = vadd.s32 4294967294, %v444_v24  ;;  %vm510_vm2 = vcmp.ge.s32.totalorder %v508_v25, 0  ;;  %vm473_vm5 = vcmp.ge.s32.totalorder %v471_v27, 0 }
  0x14   : > { %421 = vmatprep.mubr.f32.mxu0 %v1201_v0  ;;  %v583_v33 = vadd.s32 2, %v444_v24  ;;  %vm586_vm9 = vcmp.lt.s32.totalorder %v582_v32, 16  ;;  %v546_v44 = vadd.s32 1, %v444_v24  ;;  %vm549_vm0 = vcmp.lt.s32.totalorder %v545_v43, 16 }
  0x15   : > { %vm511_vm3 = vcmp.ge.s32.totalorder %v509_v26, 0  ;;  %vm474_vm6 = vcmp.ge.s32.totalorder %v472_v28, 0 }
  0x16   : > { %vm520_vm4 = vmpackc.low %vm511_vm3, %vm510_vm2  ;;  %vm587_vm10 = vcmp.lt.s32.totalorder %v583_v33, 16 }
  0x17   : > { %1120 = vmatmul.mubr.msk.f32.gmra.mxu0 %vm339_vm1, %v324_v7  ;;  %v521_v31 = vsel %vm520_vm4, 65537, %v1202_v2  ;;  %vm483_vm7 = vmpackc.low %vm474_vm6, %vm473_vm5  ;;  %vm550_vm1 = vcmp.lt.s32.totalorder %v546_v44, 16  ;;  %vm575_vm4 = vcmask 1031168  }
  0x18   : > { %v525_v34 = vrot.slane %v521_v31, %v1308_v30  ;;  %v484_v36 = vsel %vm483_vm7, 65537, %v1202_v2  ;;  %v529_v38 = vrot.slane %v521_v31, %v491_v35  ;;  %vm594_vm13 = vmpackc.low %vm587_vm10, %vm586_vm9  ;;  %vm538_vm7 = vcmask 1039360  }
  0x19   : > { %v488_v37 = vrot.slane %v484_v36, %v1308_v30  ;;  %v492_v47 = vrot.slane %v484_v36, %v491_v35  ;;  %v595_v49 = vsel %vm594_vm13, 65537, %v1202_v2  ;;  %vm557_vm3 = vmpackc.low %vm550_vm1, %vm549_vm0  ;;  %vm714_vm0 = vcmask 916480  }
  0x1a   : > { %vm530_vm11 = vcmp.ne.s16.totalorder %v525_v34, 0  ;;  %vm1320_vm15 = vcmp.ne.s16.totalorder %v529_v38, 0  ;;  %v603_v54 = vrot.slane %v595_v49, %v491_v35  ;;  %v599_v59 = vrot.slane %v595_v49, %v1308_v30 }
  0x1b   : > { %vm493_vm14 = vcmp.ne.s16.totalorder %v488_v37, 0  ;;  %vm1339_vm2 = vcmp.ne.s16.totalorder %v492_v47, 0  ;;  %v558_v62 = vsel %vm557_vm3, 65537, %v1202_v2 }
  0x1c   : > { %vm1353_vm5 = vcmp.ne.s16.totalorder %v603_v54, 0  ;;  %vm604_vm6 = vcmp.ne.s16.totalorder %v599_v59, 0  ;;  %v562_v5 = vrot.slane %v558_v62, %v1308_v30  ;;  %v566_v6 = vrot.slane %v558_v62, %v491_v35 }
  0x1e   : > { %vm567_vm9 = vcmp.ne.s16.totalorder %v562_v5, 0  ;;  %vm1369_vm10 = vcmp.ne.s16.totalorder %v566_v6, 0 }
  0x88   : > { %v330_v8 = vpop.permute.xlu0 %329 }
  0x8c   : > { %v335_v11 = vpop.permute.xlu0 %334 }
  0xd3   : > { %v417_v9 = vpop.f32.mrf.mxu0 }
  0xd4   : > { %v418_v13 = vadd.f32 %v417_v9, %v330_v8 }
  0xd5   : > { %v419_v10 = vpop.f32.mrf.mxu0 }
  0xd6   : > { %v420_v18 = vadd.f32 %v419_v10, %v330_v8 }
  0xd7   : > { %v423_v12 = vpop.f32.mrf.mxu0 }
  0xd8   : > { %v424_v14 = vadd.f32 %v423_v12, %v335_v11 }
  0xd9   : > { %v425_v15 = vpop.f32.mrf.mxu0 }
  0xda   : > { %v1288_v16 = vpack.c.bf16 %v424_v14, %v418_v13  ;;  %v426_v17 = vadd.f32 %v425_v15, %v335_v11 }
  0xdc   : > { %459 = vrot.lane.b32.xlu0 %v1288_v16, %s1203_s19  ;;  %497 = vrot.lane.b32.xlu1 %v1288_v16, %s1204_s20  ;;  %v1292_v19 = vpack.c.bf16 %v426_v17, %v420_v18  ;;  %v1189_v18 = vld [vmem:[%s1538_s3 + $0x4] ss:$16 sps:$4 sm:$0xff]  }
  0xdd   : > { %874 = vmatprep.mubr.bf16.mxu1 %v1189_v18 }
  0xe0   : > { %571 = vrot.lane.b32.xlu0 %v1288_v16, %s1205_s21  ;;  %499 = vrot.lane.b32.xlu1 %v1292_v19, %s1204_s20 }
  0xe4   : > { %534 = vrot.lane.b32.xlu0 %v1288_v16, %s1206_s22  ;;  %461 = vrot.lane.b32.xlu1 %v1292_v19, %s1203_s19 }
  0xe8   : > { %683 = vrot.lane.b32.xlu0 %v1288_v16, %s1207_s23  ;;  %573 = vrot.lane.b32.xlu1 %v1292_v19, %s1205_s21 }
  0xec   : > { %632 = vrot.lane.b32.xlu0 %v1288_v16, %s1208_s24  ;;  %536 = vrot.lane.b32.xlu1 %v1292_v19, %s1206_s22  ;;  %s1164_s22 = sshll.u32 %s1557_s28, 5 }
  0xf0   : > { %685 = vrot.lane.b32.xlu1 %v1292_v19, %s1207_s23 }
  0xf4   : > { %634 = vrot.lane.b32.xlu1 %v1292_v19, %s1208_s24 }
 0x14e   : > { %v460_v39 = vpop.permute.xlu0 %459  ;;  %v498_v40 = vpop.permute.xlu1 %497 }
 0x14f   : > { %v506_v41 = vsel %vm501_vm8, 0, %v498_v40  ;;  %v469_v45 = vsel %vm463_vm12, 0, %v460_v39 }
 0x150   : > { %v1315_v42 = vsel %vm530_vm11, %v506_v41, 0  ;;  %v1328_v51 = vsel %vm493_vm14, %v469_v45, 0  ;;  %vm761_vm14 = vcmask 785408  }
 0x151   : > { %674 = vrot.lane.b32.xlu0 %v1315_v42, %s1207_s23 }
 0x152   : > { %v500_v48 = vpop.permute.xlu1 %499  ;;  %v572_v55 = vpop.permute.xlu0 %571 }
 0x153   : > { %v1326_v50 = vsel %vm501_vm8, %v498_v40, %v500_v48  ;;  %vm667_vm8 = vcmask 130048  }
 0x154   : > { %v1333_v52 = vsel %vm1320_vm15, %v1326_v50, 0  ;;  %vm1381_vm11 = vmneg %vm667_vm8  ;;  %1159 = vmatprep.mubr.msk.bf16.mxu0 %vm667_vm8, %v1192_v20 }
 0x155   : > { %663 = vrot.lane.b32.xlu0 %v1328_v51, %s1207_s23  ;;  %676 = vrot.lane.b32.xlu1 %v1333_v52, %s1207_s23 }
 0x156   : > { %v462_v56 = vpop.permute.xlu1 %461  ;;  %v535_v1 = vpop.permute.xlu0 %534 }
 0x157   : > { %v1344_v57 = vsel %vm463_vm12, %v460_v39, %v462_v56  ;;  %vm614_vm12 = vcmask 261120  }
 0x158   : > { %v496_v58 = vsel %vm1339_vm2, %v1344_v57, 0  ;;  %vm1449_vm13 = vmneg %vm614_vm12 }
 0x159   : > { %623 = vrot.lane.b32.xlu0 %v1315_v42, %s1208_s24  ;;  %665 = vrot.lane.b32.xlu1 %v496_v58, %s1207_s23 }
 0x15a   : > { %v574_v61 = vpop.permute.xlu1 %573  ;;  %v684_v11 = vpop.permute.xlu0 %683 }
 0x15b   : > { %v1358_v63 = vsel %vm575_vm4, %v574_v61, 0  ;;  %v576_v4 = vsel %vm575_vm4, %v572_v55, %v574_v61 }
 0x15c   : > { %v607_v3 = vsel %vm1353_vm5, %v1358_v63, 0  ;;  %v1367_v2 = vsel %vm604_vm6, %v576_v4, 0 }
 0x15d   : > { %610 = vrot.lane.b32.xlu0 %v1328_v51, %s1208_s24  ;;  %656 = vrot.lane.b32.xlu1 %v607_v3, %s1208_s24 }
 0x15e   : > { %v537_v7 = vpop.permute.xlu1 %536  ;;  %v633_v24 = vpop.permute.xlu0 %632 }
 0x15f   : > { %v539_v9 = vsel %vm538_vm7, %v535_v1, %v537_v7  ;;  %v1373_v10 = vsel %vm538_vm7, %v537_v7, 0 }
 0x160   : > { %v1385_v15 = vsel %vm567_vm9, %v539_v9, 0  ;;  %v570_v17 = vsel %vm1369_vm10, %v1373_v10, 0 }
 0x161   : > { %779 = vrot.lane.b32.xlu1 %v1292_v19, %s1209_s25  ;;  %654 = vrot.lane.b32.xlu0 %v1367_v2, %s1208_s24 }
 0x162   : > { %v686_v12 = vpop.permute.xlu1 %685 }
 0x163   : > { %v687_v13 = vsel %vm667_vm8, %v684_v11, %v686_v12 }
 0x164   : > { %842 = vmatprep.subr.bf16.mxu1 %v687_v13 }
 0x165   : > { %645 = vrot.lane.b32.xlu1 %v570_v17, %s1208_s24  ;;  %643 = vrot.lane.b32.xlu0 %v1385_v15, %s1208_s24 }
 0x166   : > { %1126 = vmatpush1.bf16.msk.msra.mxu1 %vm1381_vm11, %v684_v11  ;;  %v635_v25 = vpop.permute.xlu1 %634 }
 0x167   : > { %v636_v43 = vsel %vm614_vm12, %v633_v24, %v635_v25 }
 0x169   : > { %625 = vrot.lane.b32.xlu1 %v1333_v52, %s1208_s24  ;;  %710 = vrot.lane.b32.xlu0 %v1328_v51, %s1210_s26 }
 0x16d   : > { %612 = vrot.lane.b32.xlu1 %v496_v58, %s1208_s24  ;;  %777 = vrot.lane.b32.xlu0 %v1288_v16, %s1209_s25 }
 0x171   : > { %732 = vrot.lane.b32.xlu1 %v1292_v19, %s1210_s26  ;;  %768 = vrot.lane.b32.xlu0 %v1315_v42, %s1209_s25 }
 0x175   : > { %788 = vrot.lane.b32.xlu1 %v570_v17, %s1209_s25  ;;  %786 = vrot.lane.b32.xlu0 %v1385_v15, %s1209_s25 }
 0x179   : > { %712 = vrot.lane.b32.xlu1 %v496_v58, %s1210_s26  ;;  %757 = vrot.lane.b32.xlu0 %v1328_v51, %s1209_s25 }
 0x17d   : > { %770 = vrot.lane.b32.xlu1 %v1333_v52, %s1209_s25  ;;  %730 = vrot.lane.b32.xlu0 %v1288_v16, %s1210_s26 }
 0x181   : > { %759 = vrot.lane.b32.xlu1 %v496_v58, %s1209_s25  ;;  %721 = vrot.lane.b32.xlu0 %v1315_v42, %s1210_s26 }
 0x185   : > { %750 = vrot.lane.b32.xlu1 %v607_v3, %s1210_s26  ;;  %748 = vrot.lane.b32.xlu0 %v1367_v2, %s1210_s26 }
 0x189   : > { %741 = vrot.lane.b32.xlu1 %v570_v17, %s1210_s26  ;;  %739 = vrot.lane.b32.xlu0 %v1385_v15, %s1210_s26 }
 0x18d   : > { %703 = vrot.lane.b32.xlu1 %v607_v3, %s1207_s23  ;;  %701 = vrot.lane.b32.xlu0 %v1367_v2, %s1207_s23 }
 0x191   : > { %723 = vrot.lane.b32.xlu1 %v1333_v52, %s1210_s26  ;;  %692 = vrot.lane.b32.xlu0 %v1385_v15, %s1207_s23 }
 0x195   : > { %694 = vrot.lane.b32.xlu1 %v570_v17, %s1207_s23  ;;  %795 = vrot.lane.b32.xlu0 %v1367_v2, %s1209_s25 }
 0x199   : > { %797 = vrot.lane.b32.xlu1 %v607_v3, %s1209_s25  ;;  %817 = vperm.xlu0 %1184, %v809_v21   ;;  %v1190_v21 = vld [vmem:[%s1538_s3 + $0x8] ss:$16 sps:$4 sm:$0xff]   ;;  %s313_s25 = scalar_lea.vmem %s1542_s7, %s1164_s22 }
 0x19d   : > { %932 = vperm.xlu0 %1184, %v929_v22   ;;  %812 = vperm.xlu1 %1185, %v808_v23  }
 0x1c3   : > { %v675_v26 = vpop.permute.xlu0 %674 }
 0x1c7   : > { %v664_v27 = vpop.permute.xlu0 %663  ;;  %v677_v28 = vpop.permute.xlu1 %676 }
 0x1c8   : > { %v678_v29 = vsel %vm667_vm8, %v675_v26, %v677_v28 }
 0x1c9   : > { %844 = vmatprep.subr.bf16.mxu1 %v678_v29 }
 0x1ca   : > { %1128 = vmatpush1.bf16.msk.msra.mxu1 %vm1381_vm11, %v675_v26 }
 0x1cb   : > { %v624_v30 = vpop.permute.xlu0 %623  ;;  %v666_v31 = vpop.permute.xlu1 %665 }
 0x1cc   : > { %v668_v32 = vsel %vm667_vm8, %v664_v27, %v666_v31 }
 0x1cd   : > { %846 = vmatprep.subr.bf16.mxu1 %v668_v32 }
 0x1ce   : > { %1130 = vmatpush1.bf16.msk.msra.mxu1 %vm1381_vm11, %v664_v27 }
 0x1cf   : > { %v611_v33 = vpop.permute.xlu0 %610  ;;  %v657_v34 = vpop.permute.xlu1 %656 }
 0x1d3   : > { %v655_v35 = vpop.permute.xlu0 %654  ;;  %v780_v36 = vpop.permute.xlu1 %779 }
 0x1d4   : > { %v658_v38 = vsel %vm614_vm12, %v655_v35, %v657_v34 }
 0x1d5   : > { %848 = vmatprep.subr.bf16.mxu1 %v658_v38  ;;  %v928_v38 = vld [vmem:[%s1540_s5] sm:$0x7] }
 0x1d6   : > { %1132 = vmatpush1.bf16.msk.msra.mxu1 %vm1449_vm13, %v655_v35 }
 0x1d7   : > { %v644_v39 = vpop.permute.xlu0 %643  ;;  %v646_v40 = vpop.permute.xlu1 %645 }
 0x1d8   : > { %v647_v41 = vsel %vm614_vm12, %v644_v39, %v646_v40 }
 0x1d9   : > { %850 = vmatprep.subr.bf16.mxu1 %v647_v41 }
 0x1da   : > { %1134 = vmatpush1.bf16.msk.msra.mxu1 %vm1449_vm13, %v644_v39 }
 0x1db   : > { %v711_v44 = vpop.permute.xlu0 %710  ;;  %852 = vmatprep.subr.bf16.mxu1 %v636_v43  ;;  %v626_v45 = vpop.permute.xlu1 %625 }
 0x1dc   : > { %v627_v47 = vsel %vm614_vm12, %v624_v30, %v626_v45 }
 0x1de   : > { %1136 = vmatpush1.bf16.msk.msra.mxu1 %vm1449_vm13, %v633_v24 }
 0x1df   : > { %v778_v48 = vpop.permute.xlu0 %777  ;;  %854 = vmatprep.subr.bf16.mxu1 %v627_v47  ;;  %v613_v49 = vpop.permute.xlu1 %612 }
 0x1e0   : > { %v615_v52 = vsel %vm614_vm12, %v611_v33, %v613_v49  ;;  %v781_v1 = vsel %vm761_vm14, %v778_v48, %v780_v36 }
 0x1e2   : > { %1138 = vmatpush1.bf16.msk.msra.mxu1 %vm1449_vm13, %v624_v30 }
 0x1e3   : > { %v769_v54 = vpop.permute.xlu0 %768  ;;  %856 = vmatprep.subr.bf16.mxu1 %v615_v52  ;;  %v733_v55 = vpop.permute.xlu1 %732 }
 0x1e6   : > { %1140 = vmatpush1.bf16.msk.msra.mxu1 %vm1449_vm13, %v611_v33 }
 0x1e7   : > { %v787_v56 = vpop.permute.xlu0 %786  ;;  %v789_v58 = vpop.permute.xlu1 %788 }
 0x1e8   : > { %v790_v59 = vsel %vm761_vm14, %v787_v56, %v789_v58  ;;  %1150 = vmatprep.subr.msk.bf16.mxu0 %vm761_vm14, %v789_v58 }
 0x1e9   : > { %886 = vmatpush1.bf16.msra.mxu0 %v790_v59 }
 0x1ea   : > { %1151 = vmatprep.subr.msk.bf16.mxu0 %vm761_vm14, %v780_v36 }
 0x1eb   : > { %v758_v61 = vpop.permute.xlu0 %757  ;;  %v713_v62 = vpop.permute.xlu1 %712 }
 0x1ec   : > { %1141 = vmatprep.subr.msk.bf16.mxu1 %vm714_vm0, %v713_v62  ;;  %v715_v3 = vsel %vm714_vm0, %v711_v44, %v713_v62 }
 0x1ed   : > { %859 = vmatpush2.bf16.msra.mxu1 %v715_v3  ;;  %888 = vmatpush1.bf16.msra.mxu0 %v781_v1 }
 0x1ee   : > { %1142 = vmatprep.subr.msk.bf16.mxu1 %vm1353_vm5, %v1358_v63 }
 0x1ef   : > { %v731_v4 = vpop.permute.xlu0 %730  ;;  %v771_v5 = vpop.permute.xlu1 %770 }
 0x1f0   : > { %v772_v6 = vsel %vm761_vm14, %v769_v54, %v771_v5  ;;  %1152 = vmatprep.subr.msk.bf16.mxu0 %vm761_vm14, %v771_v5  ;;  %v734_v46 = vsel %vm714_vm0, %v731_v4, %v733_v55 }
 0x1f1   : > { %861 = vmatpush2.bf16.msra.mxu1 %v1367_v2  ;;  %890 = vmatpush1.bf16.msra.mxu0 %v772_v6 }
 0x1f2   : > { %1143 = vmatprep.subr.msk.bf16.mxu1 %vm1369_vm10, %v1373_v10 }
 0x1f3   : > { %v722_v7 = vpop.permute.xlu0 %721  ;;  %v760_v9 = vpop.permute.xlu1 %759 }
 0x1f4   : > { %v762_v11 = vsel %vm761_vm14, %v758_v61, %v760_v9  ;;  %1153 = vmatprep.subr.msk.bf16.mxu0 %vm761_vm14, %v760_v9 }
 0x1f5   : > { %863 = vmatpush2.bf16.msra.mxu1 %v1385_v15  ;;  %892 = vmatpush1.bf16.msra.mxu0 %v762_v11 }
 0x1f6   : > { %864 = vmatprep.subr.bf16.mxu1 %v1292_v19 }
 0x1f7   : > { %v749_v60 = vpop.permute.xlu0 %748  ;;  %v751_v63 = vpop.permute.xlu1 %750 }
 0x1f8   : > { %v752_v2 = vsel %vm714_vm0, %v749_v60, %v751_v63  ;;  %1154 = vmatprep.subr.msk.bf16.mxu0 %vm714_vm0, %v751_v63 }
 0x1f9   : > { %865 = vmatpush2.bf16.msra.mxu1 %v1288_v16  ;;  %894 = vmatpush1.bf16.msra.mxu0 %v752_v2 }
 0x1fa   : > { %1144 = vmatprep.subr.msk.bf16.mxu1 %vm1320_vm15, %v1326_v50 }
 0x1fb   : > { %v740_v8 = vpop.permute.xlu0 %739  ;;  %v742_v10 = vpop.permute.xlu1 %741 }
 0x1fc   : > { %v743_v12 = vsel %vm714_vm0, %v740_v8, %v742_v10  ;;  %1155 = vmatprep.subr.msk.bf16.mxu0 %vm714_vm0, %v742_v10 }
 0x1fd   : > { %867 = vmatpush2.bf16.msra.mxu1 %v1315_v42  ;;  %896 = vmatpush1.bf16.msra.mxu0 %v743_v12 }
 0x1fe   : > { %1145 = vmatprep.subr.msk.bf16.mxu1 %vm1339_vm2, %v1344_v57  ;;  %1156 = vmatprep.subr.msk.bf16.mxu0 %vm714_vm0, %v733_v55 }
 0x1ff   : > { %v702_v16 = vpop.permute.xlu0 %701  ;;  %v704_v19 = vpop.permute.xlu1 %703 }
 0x200   : > { %v705_v50 = vsel %vm667_vm8, %v702_v16, %v704_v19 }
 0x201   : > { %869 = vmatpush2.bf16.msra.mxu1 %v1328_v51  ;;  %898 = vmatpush1.bf16.msra.mxu0 %v734_v46  ;;  %v1187_v51 = vld [vmem:[%s1538_s3] ss:$16 sps:$4 sm:$0xff]  }
 0x202   : > { %870 = vmatprep.subr.bf16.mxu1 %v705_v50 }
 0x203   : > { %v724_v13 = vpop.permute.xlu1 %723  ;;  %v693_v15 = vpop.permute.xlu0 %692 }
 0x204   : > { %v725_v42 = vsel %vm714_vm0, %v722_v7, %v724_v13  ;;  %1157 = vmatprep.subr.msk.bf16.mxu0 %vm714_vm0, %v724_v13 }
 0x205   : > { %1147 = vmatpush2.bf16.msk.msra.mxu1 %vm1381_vm11, %v702_v16  ;;  %900 = vmatpush1.bf16.msra.mxu0 %v725_v42 }
 0x207   : > { %v695_v53 = vpop.permute.xlu1 %694  ;;  %v796_v17 = vpop.permute.xlu0 %795 }
 0x208   : > { %v696_v57 = vsel %vm667_vm8, %v693_v15, %v695_v53 }
 0x209   : > { %872 = vmatprep.subr.bf16.mxu1 %v696_v57 }
 0x20a   : > { %1149 = vmatpush2.bf16.msk.msra.mxu1 %vm1381_vm11, %v693_v15 }
 0x20b   : > { %v798_v18 = vpop.permute.xlu1 %797 }
 0x20c   : > { %v799_v20 = vsel %vm761_vm14, %v796_v17, %v798_v18  ;;  %1158 = vmatprep.subr.msk.bf16.mxu0 %vm761_vm14, %v798_v18 }
 0x20d   : > { %875 = vmatmul.mubr.bf16.vlgmr.msra.gmra.mxu1 %v1187_v51  ;;  %916 = vmatpush2.bf16.msra.mxu0 %v799_v20 }
 0x210   : > { %918 = vmatmul.mubr.bf16.vlgmr.msra.gmra.mxu0 %v1190_v21 }
 0x211   : > { %1002 = vmatprep.mubr.f32.mxu0 %v1201_v0 }
 0x214   : > { %v818_v27 = vpop.permute.xlu0 %817 }
 0x218   : > { %v813_v22 = vpop.permute.xlu1 %812  ;;  %v933_v40 = vpop.permute.xlu0 %932 }
 0x2cd   : > { %v876_v23 = vpop.f32.mrf.mxu1 }
 0x2ce   : > { %v877_v14 = vadd.f32 %v876_v23, %v813_v22 }
 0x2cf   : > { %v878_v24 = vpop.f32.mrf.mxu1 }
 0x2d0   : > { %v879_v25 = vadd.f32 %v878_v24, %v813_v22  ;;  %v919_v26 = vpop.f32.mrf.mxu0 }
 0x2d1   : > { %v920_v28 = vadd.f32 %v919_v26, %v877_v14  ;;  %v880_v29 = vpop.f32.mrf.mxu1 }
 0x2d2   : > { %v881_v30 = vadd.f32 %v880_v29, %v818_v27  ;;  %v921_v31 = vpop.f32.mrf.mxu0 }
 0x2d3   : > { %1009 = vst [vmem:[%s313_s25] sm:$0xff] %v920_v28  ;;  %v922_v32 = vadd.f32 %v921_v31, %v879_v25  ;;  %v882_v33 = vpop.f32.mrf.mxu1 }
 0x2d4   : > { %v883_v0 = vadd.f32 %v882_v33, %v818_v27  ;;  %v923_v34 = vpop.f32.mrf.mxu0 }
 0x2d5   : > { %1010 = vst [vmem:[%s313_s25 + $0x8] sm:$0xff] %v922_v32  ;;  %v924_v35 = vadd.f32 %v923_v34, %v881_v30 }
 0x2d6   : > { %v925_v36 = vpop.f32.mrf.mxu0 }
 0x2d7   : > { %1011 = vst [vmem:[%s313_s25 + $0x10] sm:$0xff] %v924_v35  ;;  %v926_v37 = vadd.f32 %v925_v36, %v883_v0 }
 0x2d9   : > { %1012 = vst [vmem:[%s313_s25 + $0x18] sm:$0xff] %v926_v37  ;;  %966 = vmatprep.subr.mxu0 %v926_v37 }
 0x2da   : > { %967 = vmatpush1.msra.mxu0 %v924_v35 }
 0x2db   : > { %968 = vmatprep.subr.mxu0 %v922_v32 }
 0x2dc   : > { %969 = vmatpush1.msra.mxu0 %v920_v28 }
 0x2dd   : > { %1160 = vmatmul.mubr.msk.f32.vlgmr.msra.gmra.mxu0 %vm667_vm8, %v928_v38 }
 0x39d   : > { %v1004_v39 = vpop.f32.mrf.mxu0 }
 0x39e   : > { %v1005_v43 = vadd.f32 %v1004_v39, %v933_v40 }
 0x39f   : > { %v1006_v41 = vpop.f32.mrf.mxu0 }
 0x3a0   : > { %v1007_v44 = vadd.f32 %v1006_v41, %v933_v40 }
 0x3a2   : > { %v1015_v45 = vcombine.low %v1005_v43, %v1007_v44 }
 0x3a4   : > { %1017 = vst [vmem:[%s318_s11] sm:$0x77] %v1015_v45 }
 0x3a5 PF: > { %s19_s27 = sadd.s32 1, %s1199_s27  }
 0x3a6   : > { %p16_p4 = scmp.ge.s32.totalorder %s19_s27, 4  }
 0x3a8   :  { %18 = sbr.rel (!%p16_p4) target bundleno = 1 (0x1), region = 90 }

</bundles_post_ra>
